<compile_context>
chip_gen: v7x
topology: tpu7x:2x2x1
jax: 0.10.0
libtpu: 0.0.40
codegen_flags: <defaults>
</compile_context>

<pallas_src>
import functools

import numpy as np
import jax
import jax.numpy as jnp
from jax import lax
from jax.experimental import pallas as pl
from jax.experimental.pallas import tpu as pltpu


def _tensorcores_per_device():
    """Best-effort: 2 on dual-TensorCore chips (v7x / v4 / v5p), else 1."""
    try:
        kind = jax.devices()[0].device_kind.lower()
    except Exception:
        return 1
    if ("v7" in kind) or ("7x" in kind) or ("v4" in kind) or ("v5p" in kind):
        return 2
    return 1


def _aux_refine_kernel(x_ref, w_ref, o_ref, *, C, Wp, OFF, L_mid, L_out):
    """One grid step (one TensorCore's worth of batch elements).

    x_ref : (1, P8, L_in)  rows [0,C): flattened reflect-padded input channels
                            (per-batch layout [OFF zeros][padded img][OFF zeros]),
                            rows [C,C+4): 0/1 reflect-rebuild select masks.
    w_ref : (P8, 9*P8)     fused per-tap weights: rows [0,C) conv1, row C gate
                            (centre tap only), row C+1 conv2.
    o_ref : (1, 1, L_out)  lane-dense flat output slab.
    """
    P8 = x_ref.shape[1]
    fz = x_ref[0]                                   # (P8, L_in)
    w_all = w_ref[...]                              # (P8, 9*P8)

    shifts = tuple(dy * Wp + dx for dy in range(3) for dx in range(3))

    # ---- conv1 (3x3, C->C) + fused 1x1 gate: ONE MXU matmul (K = 9*P8) ------
    rhs1 = jnp.concatenate([fz[:, s:s + L_mid] for s in shifts], axis=0)
    acc = jnp.dot(w_all, rhs1, preferred_element_type=jnp.float32)   # (P8, L_mid)

    # gate (row C) at the output-lane convention used by conv2 (shift by OFF)
    gate = jax.nn.sigmoid(acc[C:C + 1, OFF:OFF + L_out])             # (1, L_out)

    # ---- ReLU + in-register reflect(1) rebuild (XLU rolls + selects) --------
    h = jnp.maximum(acc, 0.0)
    m_col0 = fz[C + 0:C + 1, :L_mid] != 0.0          # padded col 0
    m_colW = fz[C + 1:C + 2, :L_mid] != 0.0          # padded col Wp-1
    m_row0 = fz[C + 2:C + 3, :L_mid] != 0.0          # padded row 0
    m_rowH = fz[C + 3:C + 4, :L_mid] != 0.0          # padded row Hp-1
    left = pltpu.roll(h, L_mid - 2, axis=1)          # [q] <- h[q + 2]
    right = pltpu.roll(h, 2, axis=1)                 # [q] <- h[q - 2]
    core = jnp.where(m_col0, left, jnp.where(m_colW, right, h))
    up = pltpu.roll(core, L_mid - 2 * Wp, axis=1)    # [q] <- core[q + 2*Wp]
    down = pltpu.roll(core, 2 * Wp, axis=1)          # [q] <- core[q - 2*Wp]
    fh = jnp.where(m_row0, up, jnp.where(m_rowH, down, core))        # (P8, L_mid)

    # ---- conv2 (3x3, C->1): second single MXU matmul with the SAME LHS ------
    rhs2 = jnp.concatenate([fh[:, s:s + L_out] for s in shifts], axis=0)
    dp = jnp.dot(w_all, rhs2, preferred_element_type=jnp.float32)    # (P8, L_out)

    # whole-vreg, unmasked lane-dense store
    o_ref[0] = dp[C + 1:C + 2, :] * gate


def aux_refinement_block(feat, w1, w2, wg):
    """feat: [B, C, H, W] -> [B, 1, H, W]  (== AuxRefinementBlock.forward)."""
    B, C, H, W = feat.shape
    assert H >= 2 and W >= 2, "reflect(1) padding requires H, W >= 2"
    assert W <= 61, "single-128-lane tap halo assumes W <= 61"
    f32 = jnp.float32

    Wp, Hp = W + 2, H + 2
    NPAD = Hp * Wp                     # flattened padded-image length
    OFF = Wp + 1                       # centre-tap offset
    S = NPAD + 2 * OFF                 # per-batch lane stride (with zero halos)

    # batch grouping: one grid step per TensorCore, remaining batch elements
    # lane-packed inside each step (single-TC chips -> one big step).
    n_steps = max(1, min(B, _tensorcores_per_device()))
    G = -(-B // n_steps)               # batch elements per grid step
    Bp = n_steps * G

    P8 = ((C + 4 + 7) // 8) * 8        # sublane rows: C data + 4 mask rows
    L_out = ((G * S + 127) // 128) * 128       # output / dp / gate width
    L_mid = L_out + 128                        # acc / h / fh width
    L_in = L_mid + 128                         # input slab width

    # ---- lane-dense flattened input slab ------------------------------------
    xpad = jnp.pad(feat.astype(f32), ((0, 0), (0, 0), (1, 1), (1, 1)),
                   mode='reflect')
    xflat = xpad.reshape(B, C, NPAD)
    if Bp != B:
        xflat = jnp.pad(xflat, ((0, Bp - B), (0, 0), (0, 0)))
    xslab = jnp.pad(xflat, ((0, 0), (0, 0), (OFF, OFF)))            # (Bp, C, S)
    xg = (xslab.reshape(n_steps, G, C, S)
               .transpose(0, 2, 1, 3)
               .reshape(n_steps, C, G * S))
    data = jnp.pad(xg, ((0, 0), (0, 0), (0, L_in - G * S)))          # (n_steps,C,L_in)

    # ---- reflect-rebuild 0/1 select masks, embedded as spare sublane rows ---
    lane = np.arange(L_mid, dtype=np.int64)
    g_idx = lane // S
    q = lane - g_idx * S               # padded-flat position within the batch
    valid = (g_idx < G) & (q < NPAD)
    col = q % Wp
    row = q // Wp
    masks_np = np.stack([valid & (col == 0),
                         valid & (col == Wp - 1),
                         valid & (row == 0),
                         valid & (row == Hp - 1)]).astype(np.float32)
    masks_np = np.pad(masks_np, ((0, 0), (0, L_in - L_mid)))
    masks = jnp.broadcast_to(jnp.asarray(masks_np)[None], (n_steps, 4, L_in))
    pad_rows = jnp.zeros((n_steps, P8 - C - 4, L_in), f32)
    fz = jnp.concatenate([data, masks, pad_rows], axis=1)            # (n_steps,P8,L_in)

    # ---- single fused weight matrix: conv1 taps + gate + conv2 taps ---------
    w1t = jnp.transpose(w1.astype(f32), (2, 3, 0, 1)).reshape(9, C, C)   # [t,o,i]
    w2t = jnp.transpose(w2.astype(f32), (2, 3, 0, 1)).reshape(9, 1, C)
    wt = jnp.zeros((9, P8, P8), f32)
    wt = wt.at[:, :C, :C].set(w1t)                    # rows [0,C)  : conv1
    wt = wt.at[:, C + 1, :C].set(w2t[:, 0, :])        # row  C+1    : conv2
    wt = wt.at[4, C, :C].set(wg.astype(f32)[0, :, 0, 0])  # row C, centre: gate
    w_all = jnp.transpose(wt, (1, 0, 2)).reshape(P8, 9 * P8)

    kernel = functools.partial(_aux_refine_kernel, C=C, Wp=Wp, OFF=OFF,
                               L_mid=L_mid, L_out=L_out)
    out_flat = pl.pallas_call(
        kernel,
        out_shape=jax.ShapeDtypeStruct((n_steps, 1, L_out), f32),
        grid=(n_steps,),
        in_specs=[
            pl.BlockSpec((1, P8, L_in), lambda b: (b, 0, 0)),
            pl.BlockSpec((P8, 9 * P8), lambda b: (0, 0)),
        ],
        out_specs=pl.BlockSpec((1, 1, L_out), lambda b: (b, 0, 0)),
        compiler_params=pltpu.CompilerParams(
            dimension_semantics=("parallel",)),
    )(fz, w_all)

    # ---- extract interior output lanes (stride-Wp rows) -> [B, 1, H, W] -----
    res = out_flat[:, 0, :]                                          # (n_steps, L_out)
    rows = [res[:, g * S:g * S + H * Wp] for g in range(G)]
    out = jnp.stack(rows, axis=1).reshape(Bp, 1, H, Wp)
    return out[:B, :, :, :W]


def _reference(feat, w1, w2, wg):
    """Pure-JAX reference reproducing the PyTorch forward (full f32)."""
    dn = ('NCHW', 'OIHW', 'NCHW')
    prec = lax.Precision.HIGHEST
    xp = jnp.pad(feat, ((0, 0), (0, 0), (1, 1), (1, 1)), mode='reflect')
    h = lax.conv_general_dilated(xp, w1, (1, 1), 'VALID',
                                 dimension_numbers=dn, precision=prec)
    h = jnp.maximum(h, 0.0)
    hp = jnp.pad(h, ((0, 0), (0, 0), (1, 1), (1, 1)), mode='reflect')
    delta = lax.conv_general_dilated(hp, w2, (1, 1), 'VALID',
                                     dimension_numbers=dn, precision=prec)
    mask = jax.nn.sigmoid(
        lax.conv_general_dilated(feat, wg, (1, 1), 'VALID',
                                 dimension_numbers=dn, precision=prec))
    return delta * mask


if __name__ == "__main__":
    B, C, H, W = 2, 4, 16, 16

    key = jax.random.PRNGKey(0)
    k_feat, k_w1, k_w2, k_wg = jax.random.split(key, 4)

    feat = jax.random.normal(k_feat, (B, C, H, W), dtype=jnp.float32)
    # Deterministic synthetic parameters (PyTorch OIHW layout), no bias.
    w1 = 0.2 * jax.random.normal(k_w1, (C, C, 3, 3), dtype=jnp.float32)
    w2 = 0.2 * jax.random.normal(k_w2, (1, C, 3, 3), dtype=jnp.float32)
    wg = 0.2 * jax.random.normal(k_wg, (1, C, 1, 1), dtype=jnp.float32)

    fn = jax.jit(aux_refinement_block)
    out = jax.block_until_ready(fn(feat, w1, w2, wg))
    ref = jax.block_until_ready(_reference(feat, w1, w2, wg))

    assert out.shape == (B, 1, H, W)
    err = float(jnp.max(jnp.abs(out - ref)))
    assert err < 1e-4, f"mismatch vs reference: max abs err {err}"

    print("KERNEL_OK")
</pallas_src>

<mosaic_0001>
module attributes {stable_mosaic.version = 11 : i64} {
  func.func @_aux_refine_kernel(%arg0: i32, %arg1: memref<1x8x1024xf32, #tpu.memory_space<vmem>>, %arg2: memref<8x72xf32, #tpu.memory_space<vmem>>, %arg3: memref<1x1x768xf32, #tpu.memory_space<vmem>>) attributes {dimension_semantics = [#tpu.dimension_semantics<parallel>], iteration_bounds = array<i64: 1>, scalar_prefetch = 0 : i64, scratch_operands = 0 : i64, tpu.core_type = #tpu.core_type<tc>, window_params = [{transform_indices = @transform_0, window_bounds = array<i64: 1, 8, 1024>}, {pipeline_mode = #tpu.pipeline_mode<synchronous>, transform_indices = @transform_1, window_bounds = array<i64: 8, 72>}, {transform_indices = @transform_2, window_bounds = array<i64: 1, 1, 768>}]} {
    %c0 = arith.constant 0 : index
    %c0_0 = arith.constant 0 : index
    %c0_1 = arith.constant 0 : index
    %0 = vector.load %arg1[%c0, %c0_0, %c0_1] : memref<1x8x1024xf32, #tpu.memory_space<vmem>>, vector<1x8x1024xf32>
    %1 = vector.shape_cast %0 : vector<1x8x1024xf32> to vector<8x1024xf32>
    %c0_2 = arith.constant 0 : index
    %c0_3 = arith.constant 0 : index
    %2 = vector.load %arg2[%c0_2, %c0_3] : memref<8x72xf32, #tpu.memory_space<vmem>>, vector<8x72xf32>
    %3 = vector.extract_strided_slice %1 {offsets = [0, 0], sizes = [8, 896], strides = [1, 1]} : vector<8x1024xf32> to vector<8x896xf32>
    %4 = vector.extract_strided_slice %1 {offsets = [0, 1], sizes = [8, 896], strides = [1, 1]} : vector<8x1024xf32> to vector<8x896xf32>
    %5 = vector.extract_strided_slice %1 {offsets = [0, 2], sizes = [8, 896], strides = [1, 1]} : vector<8x1024xf32> to vector<8x896xf32>
    %6 = vector.extract_strided_slice %1 {offsets = [0, 18], sizes = [8, 896], strides = [1, 1]} : vector<8x1024xf32> to vector<8x896xf32>
    %7 = vector.extract_strided_slice %1 {offsets = [0, 19], sizes = [8, 896], strides = [1, 1]} : vector<8x1024xf32> to vector<8x896xf32>
    %8 = vector.extract_strided_slice %1 {offsets = [0, 20], sizes = [8, 896], strides = [1, 1]} : vector<8x1024xf32> to vector<8x896xf32>
    %9 = vector.extract_strided_slice %1 {offsets = [0, 36], sizes = [8, 896], strides = [1, 1]} : vector<8x1024xf32> to vector<8x896xf32>
    %10 = vector.extract_strided_slice %1 {offsets = [0, 37], sizes = [8, 896], strides = [1, 1]} : vector<8x1024xf32> to vector<8x896xf32>
    %11 = vector.extract_strided_slice %1 {offsets = [0, 38], sizes = [8, 896], strides = [1, 1]} : vector<8x1024xf32> to vector<8x896xf32>
    %12 = tpu.concatenate %3, %4, %5, %6, %7, %8, %9, %10, %11 in 0 : vector<8x896xf32>, vector<8x896xf32>, vector<8x896xf32>, vector<8x896xf32>, vector<8x896xf32>, vector<8x896xf32>, vector<8x896xf32>, vector<8x896xf32>, vector<8x896xf32> -> vector<72x896xf32>
    %cst = arith.constant dense<0.000000e+00> : vector<8x896xf32>
    %13 = tpu.matmul %2, %12, %cst {dimension_numbers = #tpu.dot_dimension_numbers<[1], [0], [0], [1], [0, 0, 1, 1], [], []>} : vector<8x72xf32>, vector<72x896xf32>, vector<8x896xf32> -> vector<8x896xf32>
    %14 = vector.extract_strided_slice %13 {offsets = [4, 19], sizes = [1, 768], strides = [1, 1]} : vector<8x896xf32> to vector<1x768xf32>
    %15 = arith.negf %14 : vector<1x768xf32>
    %16 = math.exp %15 : vector<1x768xf32>
    %cst_4 = arith.constant 1.000000e+00 : f32
    %17 = vector.broadcast %cst_4 : f32 to vector<1x768xf32>
    %18 = arith.addf %17, %16 : vector<1x768xf32>
    %19 = arith.divf %17, %18 : vector<1x768xf32>
    %cst_5 = arith.constant 0.000000e+00 : f32
    %20 = vector.broadcast %cst_5 : f32 to vector<8x896xf32>
    %21 = arith.maximumf %13, %20 : vector<8x896xf32>
    %22 = vector.extract_strided_slice %1 {offsets = [4, 0], sizes = [1, 896], strides = [1, 1]} : vector<8x1024xf32> to vector<1x896xf32>
    %cst_6 = arith.constant 0.000000e+00 : f32
    %23 = vector.broadcast %cst_6 : f32 to vector<1x896xf32>
    %24 = arith.cmpf one, %22, %23 : vector<1x896xf32>
    %25 = vector.extract_strided_slice %1 {offsets = [5, 0], sizes = [1, 896], strides = [1, 1]} : vector<8x1024xf32> to vector<1x896xf32>
    %cst_7 = arith.constant 0.000000e+00 : f32
    %26 = vector.broadcast %cst_7 : f32 to vector<1x896xf32>
    %27 = arith.cmpf one, %25, %26 : vector<1x896xf32>
    %28 = vector.extract_strided_slice %1 {offsets = [6, 0], sizes = [1, 896], strides = [1, 1]} : vector<8x1024xf32> to vector<1x896xf32>
    %cst_8 = arith.constant 0.000000e+00 : f32
    %29 = vector.broadcast %cst_8 : f32 to vector<1x896xf32>
    %30 = arith.cmpf one, %28, %29 : vector<1x896xf32>
    %31 = vector.extract_strided_slice %1 {offsets = [7, 0], sizes = [1, 896], strides = [1, 1]} : vector<8x1024xf32> to vector<1x896xf32>
    %cst_9 = arith.constant 0.000000e+00 : f32
    %32 = vector.broadcast %cst_9 : f32 to vector<1x896xf32>
    %33 = arith.cmpf one, %31, %32 : vector<1x896xf32>
    %c894_i32 = arith.constant 894 : i32
    %34 = tpu.dynamic_rotate %21 by %c894_i32 dim 1 : vector<8x896xf32>, i32 -> vector<8x896xf32>
    %c2_i32 = arith.constant 2 : i32
    %35 = tpu.dynamic_rotate %21 by %c2_i32 dim 1 : vector<8x896xf32>, i32 -> vector<8x896xf32>
    %36 = vector.shape_cast %27 : vector<1x896xi1> to vector<1x896xi1>
    %37 = vector.broadcast %36 : vector<1x896xi1> to vector<8x896xi1>
    %38 = arith.select %37, %35, %21 : vector<8x896xi1>, vector<8x896xf32>
    %39 = vector.shape_cast %24 : vector<1x896xi1> to vector<1x896xi1>
    %40 = vector.broadcast %39 : vector<1x896xi1> to vector<8x896xi1>
    %41 = arith.select %40, %34, %38 : vector<8x896xi1>, vector<8x896xf32>
    %c860_i32 = arith.constant 860 : i32
    %42 = tpu.dynamic_rotate %41 by %c860_i32 dim 1 : vector<8x896xf32>, i32 -> vector<8x896xf32>
    %c36_i32 = arith.constant 36 : i32
    %43 = tpu.dynamic_rotate %41 by %c36_i32 dim 1 : vector<8x896xf32>, i32 -> vector<8x896xf32>
    %44 = vector.shape_cast %33 : vector<1x896xi1> to vector<1x896xi1>
    %45 = vector.broadcast %44 : vector<1x896xi1> to vector<8x896xi1>
    %46 = arith.select %45, %43, %41 : vector<8x896xi1>, vector<8x896xf32>
    %47 = vector.shape_cast %30 : vector<1x896xi1> to vector<1x896xi1>
    %48 = vector.broadcast %47 : vector<1x896xi1> to vector<8x896xi1>
    %49 = arith.select %48, %42, %46 : vector<8x896xi1>, vector<8x896xf32>
    %50 = vector.extract_strided_slice %49 {offsets = [0, 0], sizes = [8, 768], strides = [1, 1]} : vector<8x896xf32> to vector<8x768xf32>
    %51 = vector.extract_strided_slice %49 {offsets = [0, 1], sizes = [8, 768], strides = [1, 1]} : vector<8x896xf32> to vector<8x768xf32>
    %52 = vector.extract_strided_slice %49 {offsets = [0, 2], sizes = [8, 768], strides = [1, 1]} : vector<8x896xf32> to vector<8x768xf32>
    %53 = vector.extract_strided_slice %49 {offsets = [0, 18], sizes = [8, 768], strides = [1, 1]} : vector<8x896xf32> to vector<8x768xf32>
    %54 = vector.extract_strided_slice %49 {offsets = [0, 19], sizes = [8, 768], strides = [1, 1]} : vector<8x896xf32> to vector<8x768xf32>
    %55 = vector.extract_strided_slice %49 {offsets = [0, 20], sizes = [8, 768], strides = [1, 1]} : vector<8x896xf32> to vector<8x768xf32>
    %56 = vector.extract_strided_slice %49 {offsets = [0, 36], sizes = [8, 768], strides = [1, 1]} : vector<8x896xf32> to vector<8x768xf32>
    %57 = vector.extract_strided_slice %49 {offsets = [0, 37], sizes = [8, 768], strides = [1, 1]} : vector<8x896xf32> to vector<8x768xf32>
    %58 = vector.extract_strided_slice %49 {offsets = [0, 38], sizes = [8, 768], strides = [1, 1]} : vector<8x896xf32> to vector<8x768xf32>
    %59 = tpu.concatenate %50, %51, %52, %53, %54, %55, %56, %57, %58 in 0 : vector<8x768xf32>, vector<8x768xf32>, vector<8x768xf32>, vector<8x768xf32>, vector<8x768xf32>, vector<8x768xf32>, vector<8x768xf32>, vector<8x768xf32>, vector<8x768xf32> -> vector<72x768xf32>
    %cst_10 = arith.constant dense<0.000000e+00> : vector<8x768xf32>
    %60 = tpu.matmul %2, %59, %cst_10 {dimension_numbers = #tpu.dot_dimension_numbers<[1], [0], [0], [1], [0, 0, 1, 1], [], []>} : vector<8x72xf32>, vector<72x768xf32>, vector<8x768xf32> -> vector<8x768xf32>
    %61 = vector.extract_strided_slice %60 {offsets = [5, 0], sizes = [1, 768], strides = [1, 1]} : vector<8x768xf32> to vector<1x768xf32>
    %62 = arith.mulf %61, %19 : vector<1x768xf32>
    %c0_11 = arith.constant 0 : index
    %c0_12 = arith.constant 0 : index
    %c0_13 = arith.constant 0 : index
    %63 = vector.load %arg3[%c0_11, %c0_12, %c0_13] : memref<1x1x768xf32, #tpu.memory_space<vmem>>, vector<1x1x768xf32>
    %64 = vector.shape_cast %63 : vector<1x1x768xf32> to vector<1x768xf32>
    %65 = vector.shape_cast %62 : vector<1x768xf32> to vector<1x1x768xf32>
    tpu.vector_store %arg3[%c0_11, %c0_12, %c0_13], %65 {strides = array<i32>} : memref<1x1x768xf32, #tpu.memory_space<vmem>>, vector<1x1x768xf32>,
    return
  }
  func.func @transform_0(%arg0: i32) -> (i32, i32, i32) {
    %c0_i32 = arith.constant 0 : i32
    %c0_i32_0 = arith.constant 0 : i32
    %c0_i32_1 = arith.constant 0 : i32
    return %arg0, %c0_i32, %c0_i32_0 : i32, i32, i32
  }
  func.func @transform_1(%arg0: i32) -> (i32, i32) {
    %c0_i32 = arith.constant 0 : i32
    %c0_i32_0 = arith.constant 0 : i32
    %c0_i32_1 = arith.constant 0 : i32
    return %c0_i32, %c0_i32_0 : i32, i32
  }
  func.func @transform_2(%arg0: i32) -> (i32, i32, i32) {
    %c0_i32 = arith.constant 0 : i32
    %c0_i32_0 = arith.constant 0 : i32
    %c0_i32_1 = arith.constant 0 : i32
    return %arg0, %c0_i32, %c0_i32_0 : i32, i32, i32
  }
}

</mosaic_0001>

<bundles_post_ra>
// kernel: aux_refinement_block.1
= control target key start
LH: loop header
LB: loop body
LE: loop exit
PB: predicated region body
PF: predicated region fallthrough
CT: control target
= control target key end

     0   :  { %s1842_s21 = smov 127   ;;  %s1843_s22 = smov 126   ;;  %v1849_v12 = vmov 0.0   ;;  %vm44_vm0 = vcmask 1039360   ;;  %vm75_vm1 = vcmask 1031168   ;;  %vm106_vm2 = vcmask 900096   ;;  %s2654_s0 = inlined_call_operand.vmem [shape: f32[1,8,1024], index: 0, kind: input, shape index: {}]   ;;  %s2655_s1 = inlined_call_operand.vmem [shape: f32[8,72], index: 1, kind: input, shape index: {}]   ;;  %s2656_s2 = inlined_call_operand.vmem [shape: f32[1,1,768], index: 2, kind: output, shape index: {}]  }
   0x1   :  { %v1875_v0 = vld [vmem:[%s2654_s0 + $0x8] sm:$0xff]  ;;  %v1880_v1 = vld [vmem:[%s2654_s0 + $0x10] sm:$0xff]  ;;  %v1885_v2 = vld [vmem:[%s2654_s0] sm:$0xff]  ;;  %s1844_s23 = smov 110   ;;  %s1845_s24 = smov 109   ;;  %415 = vmatprep.mubr.f32.mxu1 %v1849_v12  ;;  %344 = vmatprep.mubr.f32.mxu0 %v1849_v12  ;;  %vm137_vm3 = vcmask 891904  }
   0x2   :  { %v1583_v3 = vpack.i.bf16 %v1880_v1, %v1875_v0  ;;  %v1892_v4 = vld [vmem:[%s2654_s0 + $0x28] sm:$0xff]  ;;  %v1897_v5 = vld [vmem:[%s2654_s0 + $0x18] sm:$0xff]  ;;  %v1902_v6 = vld [vmem:[%s2654_s0 + $0x20] sm:$0xff]  ;;  %s1846_s25 = smov 108   ;;  %s1847_s26 = smov 92   ;;  %vm168_vm4 = vcmask 883712  }
   0x3   :  { %v1593_v7 = vpack.i.bf16 %v1892_v4, %v1885_v2  ;;  %v1588_v8 = vpack.i.bf16 %v1902_v6, %v1897_v5  ;;  %s1848_s27 = smov 91   ;;  %v1930_v9 = vld [vmem:[%s2654_s0 + $0x30] sm:$0xff]  ;;  %v18_v10 = vld [vmem:[%s2654_s0 + $0x38] sm:$0xff]  ;;  %s1850_s4 = smov 90   ;;  %vm199_vm5 = vcmask 752640   ;;  %vm230_vm6 = vcmask 744448  }
   0x4   :  { %1584 = vrot.lane.b32.xlu0 %v1583_v3, %s1842_s21  ;;  %v1673_v11 = vpack.i.bf16 %v18_v10, %v1930_v9  ;;  %v1693_v13 = vpack.i.bf16 %v1930_v9, %v1892_v4  ;;  %vm261_vm7 = vcmask 736256   ;;  %vm2657_vm8 = vcmask 588800   ;;  %s1853_s6 = smov 2   ;;  %s1855_s7 = smov 36  }
   0x5   :  { %1594 = vrot.lane.b32.xlu1 %v1593_v7, %s1842_s21  ;;  %vm1852_vm9 = vmmov 0   ;;  %vm614_vm10 = vcmp.ne.f32.partialorder %v1880_v1, 0.0  ;;  %vm613_vm11 = vcmp.ne.f32.partialorder %v1875_v0, 0.0  ;;  %vm615_vm13 = vcmp.ne.f32.partialorder %v1897_v5, 0.0 }
   0x8   :  { %1589 = vrot.lane.b32.xlu0 %v1588_v8, %s1842_s21 }
   0x9   :  { %1599 = vrot.lane.b32.xlu1 %v1583_v3, %s1843_s22 }
   0xc   :  { %1604 = vrot.lane.b32.xlu0 %v1588_v8, %s1843_s22 }
   0xd   :  { %1609 = vrot.lane.b32.xlu1 %v1583_v3, %s1844_s23 }
  0x10   :  { %1614 = vrot.lane.b32.xlu0 %v1588_v8, %s1844_s23 }
  0x11   :  { %1619 = vrot.lane.b32.xlu1 %v1593_v7, %s1843_s22 }
  0x14   :  { %1624 = vrot.lane.b32.xlu0 %v1593_v7, %s1844_s23 }
  0x15   :  { %1629 = vrot.lane.b32.xlu1 %v1583_v3, %s1845_s24 }
  0x18   :  { %1634 = vrot.lane.b32.xlu0 %v1588_v8, %s1845_s24 }
  0x19   :  { %1639 = vrot.lane.b32.xlu1 %v1583_v3, %s1846_s25 }
  0x1c   :  { %1644 = vrot.lane.b32.xlu0 %v1588_v8, %s1846_s25 }
  0x1d   :  { %1649 = vrot.lane.b32.xlu1 %v1593_v7, %s1845_s24 }
  0x20   :  { %152 = vrot.lane.b32.xlu0 %v1885_v2, %s1846_s25 }
  0x21   :  { %1654 = vrot.lane.b32.xlu1 %v1583_v3, %s1847_s26 }
  0x24   :  { %1659 = vrot.lane.b32.xlu0 %v1588_v8, %s1847_s26 }
  0x25   :  { %1664 = vrot.lane.b32.xlu1 %v1583_v3, %s1848_s27 }
  0x28   :  { %1669 = vrot.lane.b32.xlu0 %v1588_v8, %s1848_s27 }
  0x29   :  { %183 = vrot.lane.b32.xlu1 %v1885_v2, %s1847_s26 }
  0x2c   :  { %214 = vrot.lane.b32.xlu0 %v1885_v2, %s1848_s27 }
  0x2d   :  { %1674 = vrot.lane.b32.xlu1 %v1673_v11, %s1842_s21 }
  0x30   :  { %247 = vrot.lane.b32.xlu0 %v1875_v0, %s1850_s4 }
  0x31   :  { %249 = vrot.lane.b32.xlu1 %v1880_v1, %s1850_s4 }
  0x34   :  { %251 = vrot.lane.b32.xlu0 %v1897_v5, %s1850_s4 }
  0x35   :  { %253 = vrot.lane.b32.xlu1 %v1902_v6, %s1850_s4 }
  0x38   :  { %245 = vrot.lane.b32.xlu0 %v1885_v2, %s1850_s4 }
  0x39   :  { %1679 = vrot.lane.b32.xlu1 %v1673_v11, %s1843_s22 }
  0x3c   :  { %1684 = vrot.lane.b32.xlu0 %v1673_v11, %s1844_s23 }
  0x3d   :  { %1689 = vrot.lane.b32.xlu1 %v1673_v11, %s1845_s24 }
  0x40   :  { %1694 = vrot.lane.b32.xlu0 %v1693_v13, %s1846_s25 }
  0x41   :  { %166 = vrot.lane.b32.xlu1 %v18_v10, %s1846_s25 }
  0x44   :  { %1699 = vrot.lane.b32.xlu0 %v1693_v13, %s1847_s26 }
  0x45   :  { %1704 = vrot.lane.b32.xlu1 %v1693_v13, %s1848_s27 }
  0x48   :  { %197 = vrot.lane.b32.xlu0 %v18_v10, %s1847_s26 }
  0x49   :  { %228 = vrot.lane.b32.xlu1 %v18_v10, %s1848_s27 }
  0x4c   :  { %255 = vrot.lane.b32.xlu0 %v1892_v4, %s1850_s4 }
  0x4d   :  { %257 = vrot.lane.b32.xlu1 %v1930_v9, %s1850_s4 }
  0x50   :  { %259 = vrot.lane.b32.xlu0 %v18_v10, %s1850_s4 }
  0x76   :  { %v1585_v14 = vpop.permute.xlu0 %1584 }
  0x77   :  { %v1587_v15 = vunpack.i.h.bf16 %v1585_v14  ;;  %v1586_v16 = vunpack.i.l.bf16 %v1585_v14  ;;  %v1970_v17 = vpop.permute.xlu1 %1594 }
  0x78   :  { %v1596_v18 = vunpack.i.l.bf16 %v1970_v17 }
  0x79   :  { %v46_v19 = vsel %vm44_vm0, %v1586_v16, %v1587_v15 }
  0x7a   :  { %v1974_v20 = vpop.permute.xlu0 %1589  ;;  %v1460_v21 = vpack.c.bf16 %v46_v19, %v1875_v0  ;;  %v45_v22 = vsel %vm44_vm0, %v1596_v18, %v1586_v16 }
  0x7b   :  { %v1592_v23 = vunpack.i.h.bf16 %v1974_v20  ;;  %v1591_v24 = vunpack.i.l.bf16 %v1974_v20  ;;  %v1600_v25 = vpop.permute.xlu1 %1599  ;;  %v1462_v26 = vpack.c.bf16 %v45_v22, %v1885_v2 }
  0x7c   :  { %1461 = vmatprep.subr.bf16.mxu0 %v1460_v21  ;;  %v1602_v29 = vunpack.i.h.bf16 %v1600_v25  ;;  %v1601_v30 = vunpack.i.l.bf16 %v1600_v25 }
  0x7d   :  { %1463 = vmatpush1.bf16.msra.mxu0 %v1462_v26  ;;  %v48_v27 = vsel %vm44_vm0, %v1591_v24, %v1592_v23  ;;  %v47_v28 = vsel %vm44_vm0, %v1587_v15, %v1591_v24 }
  0x7e   :  { %v1985_v31 = vpop.permute.xlu0 %1604  ;;  %v1476_v32 = vpack.c.bf16 %v48_v27, %v1897_v5  ;;  %v1478_v33 = vpack.c.bf16 %v47_v28, %v1880_v1  ;;  %v77_v40 = vsel %vm75_vm1, %v1601_v30, %v1602_v29 }
  0x7f   :  { %v1610_v34 = vpop.permute.xlu1 %1609  ;;  %v1607_v35 = vunpack.i.h.bf16 %v1985_v31  ;;  %v1606_v36 = vunpack.i.l.bf16 %v1985_v31 }
  0x80   :  { %v1612_v37 = vunpack.i.h.bf16 %v1610_v34  ;;  %v1611_v38 = vunpack.i.l.bf16 %v1610_v34  ;;  %1477 = vmatprep.subr.bf16.mxu1 %v1476_v32 }
  0x81   :  { %1479 = vmatpush1.bf16.msra.mxu1 %v1478_v33  ;;  %v79_v46 = vsel %vm75_vm1, %v1606_v36, %v1607_v35  ;;  %v78_v49 = vsel %vm75_vm1, %v1602_v29, %v1606_v36 }
  0x82   :  { %v1991_v39 = vpop.permute.xlu0 %1614  ;;  %v108_v41 = vsel %vm106_vm2, %v1611_v38, %v1612_v37 }
  0x83   :  { %v1617_v42 = vunpack.i.h.bf16 %v1991_v39  ;;  %v1616_v43 = vunpack.i.l.bf16 %v1991_v39  ;;  %v1997_v44 = vpop.permute.xlu1 %1619  ;;  %v1464_v45 = vpack.c.bf16 %v108_v41, %v77_v40 }
  0x84   :  { %v1621_v47 = vunpack.i.l.bf16 %v1997_v44 }
  0x85   :  { %1465 = vmatprep.subr.bf16.mxu0 %v1464_v45  ;;  %v110_v48 = vsel %vm106_vm2, %v1616_v43, %v1617_v42  ;;  %v109_v50 = vsel %vm106_vm2, %v1612_v37, %v1616_v43 }
  0x86   :  { %v2008_v51 = vpop.permute.xlu0 %1624  ;;  %v1480_v52 = vpack.c.bf16 %v110_v48, %v79_v46  ;;  %v1482_v53 = vpack.c.bf16 %v109_v50, %v78_v49  ;;  %v76_v56 = vsel %vm75_vm1, %v1621_v47, %v1601_v30 }
  0x87   :  { %v1626_v54 = vunpack.i.l.bf16 %v2008_v51  ;;  %v1630_v55 = vpop.permute.xlu1 %1629  ;;  %v1627_v20 = vunpack.i.h.bf16 %v2008_v51 }
  0x88   :  { %1481 = vmatprep.subr.bf16.mxu1 %v1480_v52  ;;  %v1632_v58 = vunpack.i.h.bf16 %v1630_v55  ;;  %v1631_v59 = vunpack.i.l.bf16 %v1630_v55 }
  0x89   :  { %1483 = vmatpush1.bf16.msra.mxu1 %v1482_v53  ;;  %v107_v57 = vsel %vm106_vm2, %v1626_v54, %v1611_v38  ;;  %v111_v51 = vsel %vm106_vm2, %v1617_v42, %v1627_v20 }
  0x8a   :  { %v2013_v60 = vpop.permute.xlu0 %1634  ;;  %v1466_v61 = vpack.c.bf16 %v107_v57, %v76_v56  ;;  %v139_v11 = vsel %vm137_vm3, %v1631_v59, %v1632_v58 }
  0x8b   :  { %v1640_v62 = vpop.permute.xlu1 %1639  ;;  %v1637_v7 = vunpack.i.h.bf16 %v2013_v60  ;;  %v1636_v8 = vunpack.i.l.bf16 %v2013_v60 }
  0x8c   :  { %v1642_v63 = vunpack.i.h.bf16 %v1640_v62  ;;  %v1641_v3 = vunpack.i.l.bf16 %v1640_v62  ;;  %1467 = vmatpush1.bf16.msra.mxu0 %v1466_v61 }
  0x8d   :  { %v141_v21 = vsel %vm137_vm3, %v1636_v8, %v1637_v7  ;;  %v140_v24 = vsel %vm137_vm3, %v1632_v58, %v1636_v8 }
  0x8e   :  { %v2017_v10 = vpop.permute.xlu0 %1644  ;;  %v170_v13 = vsel %vm168_vm4, %v1641_v3, %v1642_v63 }
  0x8f   :  { %v1647_v14 = vunpack.i.h.bf16 %v2017_v10  ;;  %v1646_v15 = vunpack.i.l.bf16 %v2017_v10  ;;  %v2023_v16 = vpop.permute.xlu1 %1649  ;;  %v1468_v18 = vpack.c.bf16 %v170_v13, %v139_v11 }
  0x90   :  { %v1651_v19 = vunpack.i.l.bf16 %v2023_v16 }
  0x91   :  { %1469 = vmatprep.subr.bf16.mxu0 %v1468_v18  ;;  %v172_v22 = vsel %vm168_vm4, %v1646_v15, %v1647_v14  ;;  %v171_v25 = vsel %vm168_vm4, %v1642_v63, %v1646_v15 }
  0x92   :  { %v153_v26 = vpop.permute.xlu0 %152  ;;  %v1484_v27 = vpack.c.bf16 %v172_v22, %v141_v21  ;;  %v1486_v28 = vpack.c.bf16 %v171_v25, %v140_v24  ;;  %v138_v29 = vsel %vm137_vm3, %v1651_v19, %v1631_v59  ;;  %v1597_v21 = vunpack.i.h.bf16 %v1970_v17 }
  0x93   :  { %v169_v30 = vsel %vm168_vm4, %v153_v26, %v1641_v3  ;;  %v1655_v32 = vpop.permute.xlu1 %1654 }
  0x94   :  { %v1470_v33 = vpack.c.bf16 %v169_v30, %v138_v29  ;;  %1485 = vmatprep.subr.bf16.mxu1 %v1484_v27  ;;  %v1657_v34 = vunpack.i.h.bf16 %v1655_v32  ;;  %v1656_v36 = vunpack.i.l.bf16 %v1655_v32  ;;  %v49_v17 = vsel %vm44_vm0, %v1592_v23, %v1597_v21 }
  0x95   :  { %1487 = vmatpush1.bf16.msra.mxu1 %v1486_v28  ;;  %v2067_v28 = vld [vmem:[%s2655_s1] sm:$0xff]  ;;  %v1494_v23 = vpack.c.bf16 %v49_v17, %v1902_v6 }
  0x96   :  { %v2036_v37 = vpop.permute.xlu0 %1659  ;;  %1471 = vmatpush1.bf16.msra.mxu0 %v1470_v33  ;;  %v201_v47 = vsel %vm199_vm5, %v1656_v36, %v1657_v34 }
  0x97   :  { %v1665_v38 = vpop.permute.xlu1 %1664  ;;  %v1662_v43 = vunpack.i.h.bf16 %v2036_v37  ;;  %v1661_v45 = vunpack.i.l.bf16 %v2036_v37 }
  0x98   :  { %v1667_v40 = vunpack.i.h.bf16 %v1665_v38  ;;  %v1666_v41 = vunpack.i.l.bf16 %v1665_v38 }
  0x99   :  { %v203_v54 = vsel %vm199_vm5, %v1661_v45, %v1662_v43  ;;  %v202_v56 = vsel %vm199_vm5, %v1657_v34, %v1661_v45  ;;  %v1851_v34 = vmov 0.0|0.0   ;;  %v1622_v45 = vunpack.i.h.bf16 %v1997_v44 }
  0x9a   :  { %v2040_v46 = vpop.permute.xlu0 %1669  ;;  %v232_v48 = vsel %vm230_vm6, %v1666_v41, %v1667_v40 }
  0x9b   :  { %v1672_v49 = vunpack.i.h.bf16 %v2040_v46  ;;  %v1671_v50 = vunpack.i.l.bf16 %v2040_v46  ;;  %v184_v52 = vpop.permute.xlu1 %183  ;;  %v1472_v53 = vpack.c.bf16 %v232_v48, %v201_v47 }
  0x9c   :  { %v200_v62 = vsel %vm199_vm5, %v184_v52, %v1656_v36 }
  0x9d   :  { %1473 = vmatprep.subr.bf16.mxu0 %v1472_v53  ;;  %v234_v55 = vsel %vm230_vm6, %v1671_v50, %v1672_v49  ;;  %v233_v57 = vsel %vm230_vm6, %v1667_v40, %v1671_v50  ;;  %v1652_v53 = vunpack.i.h.bf16 %v2023_v16 }
  0x9e   :  { %v215_v58 = vpop.permute.xlu0 %214  ;;  %v1488_v59 = vpack.c.bf16 %v234_v55, %v203_v54  ;;  %v1490_v61 = vpack.c.bf16 %v233_v57, %v202_v56 }
  0x9f   :  { %v231_v63 = vsel %vm230_vm6, %v215_v58, %v1666_v41  ;;  %v1675_v3 = vpop.permute.xlu1 %1674 }
  0xa0   :  { %v1474_v8 = vpack.c.bf16 %v231_v63, %v200_v62  ;;  %1489 = vmatprep.subr.bf16.mxu1 %v1488_v59  ;;  %v1677_v13 = vunpack.i.h.bf16 %v1675_v3  ;;  %v1676_v18 = vunpack.i.l.bf16 %v1675_v3  ;;  %v80_v59 = vsel %vm75_vm1, %v1607_v35, %v1622_v45 }
  0xa1   :  { %1491 = vmatpush1.bf16.msra.mxu1 %v1490_v61  ;;  %v1498_v3 = vpack.c.bf16 %v111_v51, %v80_v59 }
  0xa2   :  { %v248_v11 = vpop.permute.xlu0 %247  ;;  %1475 = vmatpush1.bf16.msra.mxu0 %v1474_v8  ;;  %v51_v24 = vsel %vm44_vm0, %v1676_v18, %v1677_v13  ;;  %v50_v29 = vsel %vm44_vm0, %v1597_v21, %v1676_v18  ;;  %v142_v8 = vsel %vm137_vm3, %v1637_v7, %v1652_v53 }
  0xa3   :  { %v250_v15 = vpop.permute.xlu1 %249  ;;  %v1509_v30 = vpack.c.bf16 %v51_v24, %v1930_v9  ;;  %v1492_v38 = vpack.c.bf16 %v50_v29, %v1892_v4 }
  0xa4   :  { %v263_v19 = vsel %vm261_vm7, %v248_v11, %v250_v15 }
  0xa5   :  { %296 = vmatprep.subr.mxu0 %v263_v19 }
  0xa6   :  { %v252_v22 = vpop.permute.xlu0 %251 }
  0xa7   :  { %v2059_v25 = vpop.permute.xlu1 %253  ;;  %v264_v26 = vsel %vm261_vm7, %v250_v15, %v252_v22 }
  0xa8   :  { %v265_v27 = vsel %vm261_vm7, %v252_v22, %v2059_v25 }
  0xa9   :  { %367 = vmatprep.subr.mxu1 %v265_v27 }
  0xaa   :  { %368 = vmatpush1.msra.mxu1 %v264_v26  ;;  %v246_v32 = vpop.permute.xlu0 %245 }
  0xab   :  { %v1680_v33 = vpop.permute.xlu1 %1679  ;;  %1508 = vmatprep.subr.bf16.mxu1 %v1851_v34  ;;  %1416 = vmatmul.mubr.msk.f32.vlgmr.msra.gmra.mrb[0].mxu1 %vm2657_vm8, %v2067_v28  ;;  %v262_v36 = vsel %vm261_vm7, %v246_v32, %v248_v11 }
  0xac   :  { %1510 = vmatpush3.bf16.msra.mxu1 %v1509_v30  ;;  %297 = vmatpush1.msra.mxu0 %v262_v36  ;;  %v1682_v40 = vunpack.i.h.bf16 %v1680_v33  ;;  %v1681_v41 = vunpack.i.l.bf16 %v1680_v33 }
  0xad   :  { %1415 = vmatmul.mubr.msk.f32.vlgmr.msra.gmra.mrb[0].mxu0 %vm2657_vm8, %v2067_v28  ;;  %1493 = vmatprep.subr.bf16.mxu0 %v1492_v38 }
  0xae   :  { %v1685_v47 = vpop.permute.xlu0 %1684  ;;  %1495 = vmatpush1.bf16.msra.mxu0 %v1494_v23  ;;  %1511 = vmatprep.subr.bf16.mxu1 %v1851_v34  ;;  %v82_v55 = vsel %vm75_vm1, %v1681_v41, %v1682_v40  ;;  %v81_v57 = vsel %vm75_vm1, %v1622_v45, %v1681_v41 }
  0xaf   :  { %v1687_v48 = vunpack.i.h.bf16 %v1685_v47  ;;  %v1686_v50 = vunpack.i.l.bf16 %v1685_v47  ;;  %v1690_v52 = vpop.permute.xlu1 %1689  ;;  %486 = vmatprep.mubr.f32.mxu0 %v1849_v12  ;;  %1457 = vmatprep.mubr.msk.f32.mxu1 %vm1852_vm9, %v1849_v12 }
  0xb0   :  { %v1692_v54 = vunpack.i.h.bf16 %v1690_v52  ;;  %v1691_v44 = vunpack.i.l.bf16 %v1690_v52 }
  0xb1   :  { %v113_v56 = vsel %vm106_vm2, %v1686_v50, %v1687_v48  ;;  %v112_v58 = vsel %vm106_vm2, %v1627_v20, %v1686_v50 }
  0xb2   :  { %v1512_v61 = vpack.c.bf16 %v113_v56, %v82_v55  ;;  %v1695_v39 = vpop.permute.xlu0 %1694  ;;  %v1496_v62 = vpack.c.bf16 %v112_v58, %v81_v57  ;;  %v144_v11 = vsel %vm137_vm3, %v1691_v44, %v1692_v54  ;;  %v143_v13 = vsel %vm137_vm3, %v1652_v53, %v1691_v44 }
  0xb3   :  { %v1697_v42 = vunpack.i.h.bf16 %v1695_v39  ;;  %v1696_v63 = vunpack.i.l.bf16 %v1695_v39  ;;  %v167_v16 = vpop.permute.xlu1 %166  ;;  %v633_v58 = vlaneseq }
  0xb4   :  { %1497 = vmatprep.subr.bf16.mxu0 %v1496_v62  ;;  %1513 = vmatpush3.bf16.msra.mxu1 %v1512_v61 }
  0xb5   :  { %v173_v31 = vsel %vm168_vm4, %v1647_v14, %v1696_v63  ;;  %v175_v35 = vsel %vm168_vm4, %v1697_v42, %v167_v16  ;;  %1499 = vmatpush1.bf16.msra.mxu0 %v1498_v3  ;;  %1514 = vmatprep.subr.bf16.mxu1 %v1851_v34  ;;  %v174_v15 = vsel %vm168_vm4, %v1696_v63, %v1697_v42  ;;  %v2184_v59 = vshrl.u32 %v633_v58, 7 }
  0xb6   :  { %v1502_v60 = vpack.c.bf16 %v173_v31, %v142_v8  ;;  %v1515_v18 = vpack.c.bf16 %v175_v35, %v144_v11  ;;  %v1700_v7 = vpop.permute.xlu0 %1699  ;;  %v1500_v19 = vpack.c.bf16 %v174_v15, %v143_v13  ;;  %v2192_v42 = vand.u32 127, %v633_v58 }
  0xb7   :  { %v1702_v21 = vunpack.i.h.bf16 %v1700_v7  ;;  %v1701_v22 = vunpack.i.l.bf16 %v1700_v7  ;;  %v1705_v24 = vpop.permute.xlu1 %1704  ;;  %v2189_v62 = vsub.s32 5, %v2184_v59  ;;  %v1854_v63 = vmov 0  }
  0xb8   :  { %v1707_v26 = vunpack.i.h.bf16 %v1705_v24  ;;  %v1706_v27 = vunpack.i.l.bf16 %v1705_v24  ;;  %1501 = vmatprep.subr.bf16.mxu0 %v1500_v19  ;;  %1516 = vmatpush3.bf16.msra.mxu1 %v1515_v18  ;;  %v2195_v16 = vsel %vm614_vm10, 1, %v1854_v63  ;;  %v2198_v3 = vsub.s32 4, %v2184_v59 }
  0xb9   :  { %v204_v10 = vsel %vm199_vm5, %v1662_v43, %v1701_v22  ;;  %1503 = vmatpush1.bf16.msra.mxu0 %v1502_v60  ;;  %v205_v14 = vsel %vm199_vm5, %v1701_v22, %v1702_v21  ;;  %1517 = vmatprep.subr.bf16.mxu1 %v1851_v34  ;;  %v2201_v8 = vsel %vm613_vm11, 1, %v1854_v63  ;;  %v683_v0 = vrot.slane %v2195_v16, %v2189_v62 }
  0xba   :  { %v235_v29 = vsel %vm230_vm6, %v1672_v49, %v1706_v27  ;;  %v198_v17 = vpop.permute.xlu0 %197  ;;  %v236_v30 = vsel %vm230_vm6, %v1706_v27, %v1707_v26  ;;  %v679_v13 = vrot.slane %v2201_v8, %v2189_v62  ;;  %vm657_vm12 = vcmp.lt.s32.totalorder %v2192_v42, 2 }
  0xbb   :  { %v1506_v32 = vpack.c.bf16 %v235_v29, %v204_v10  ;;  %v206_v33 = vsel %vm199_vm5, %v1702_v21, %v198_v17  ;;  %v229_v36 = vpop.permute.xlu1 %228  ;;  %v1504_v38 = vpack.c.bf16 %v236_v30, %v205_v14  ;;  %v725_v31 = vrot.slane %v2195_v16, %v2198_v3 }
  0xbc   :  { %v237_v37 = vsel %vm230_vm6, %v1707_v26, %v229_v36  ;;  %v721_v35 = vrot.slane %v2201_v8, %v2198_v3  ;;  %vm702_vm14 = vcmp.eq.s32.totalorder %v683_v0, 1  ;;  %vm701_vm15 = vcmp.eq.s32.totalorder %v679_v13, 1 }
  0xbd   :  { %v1518_v43 = vpack.c.bf16 %v237_v37, %v206_v33  ;;  %1505 = vmatprep.subr.bf16.mxu0 %v1504_v38  ;;  %vm744_vm9 = vcmp.eq.s32.totalorder %v725_v31, 1  ;;  %vm635_vm11 = vcmp.lt.s32.totalorder %v2192_v42, 126  ;;  %v2221_v21 = vsel %vm615_vm13, 1, %v1854_v63 }
  0xbe   :  { %1507 = vmatpush1.bf16.msra.mxu0 %v1506_v32  ;;  %v256_v20 = vpop.permute.xlu0 %255  ;;  %vm743_vm10 = vcmp.eq.s32.totalorder %v721_v35, 1  ;;  %v687_v14 = vrot.slane %v2221_v21, %v2189_v62  ;;  %v729_v17 = vrot.slane %v2221_v21, %v2198_v3 }
  0xbf   :  { %v266_v34 = vsel %vm261_vm7, %v2059_v25, %v256_v20  ;;  %v258_v46 = vpop.permute.xlu1 %257  ;;  %1519 = vmatpush3.bf16.msra.mxu1 %v1518_v43 }
  0xc0   :  { %v267_v49 = vsel %vm261_vm7, %v256_v20, %v258_v46  ;;  %1455 = vmatprep.subr.mxu1 %v1849_v12  ;;  %vm703_vm13 = vcmp.eq.s32.totalorder %v687_v14, 1 }
  0xc1   :  { %438 = vmatprep.subr.mxu0 %v267_v49 }
  0xc2   :  { %439 = vmatpush1.msra.mxu0 %v266_v34  ;;  %v260_v23 = vpop.permute.xlu0 %259 }
  0xc3   :  { %v268_v40 = vsel %vm261_vm7, %v258_v46, %v260_v23  ;;  %1417 = vmatmul.mubr.msk.f32.vlgmr.msra.gmra.mrb[2].mxu0 %vm2657_vm8, %v2067_v28 }
  0xc4   :  { %1456 = vmatpush3.msra.mxu1 %v268_v40  ;;  %1163 = vmatprep.mubr.f32.mxu0 %v1849_v12 }
  0xc5   :  { %1458 = vmatmul.mubr.msk.f32.vlgmr.msra.gmra.mrb[2].mxu1 %vm2657_vm8, %v2067_v28  ;;  %vm612_vm8 = vcmp.ne.f32.partialorder %v1885_v2, 0.0 }
  0xc6   :  { %1234 = vmatprep.mubr.f32.mxu1 %v1849_v12  ;;  %v2240_v29 = vsel %vm612_vm8, 1, %v1854_v63  ;;  %vm618_vm8 = vcmp.ne.f32.partialorder %v1930_v9, 0.0 }
  0xc7   :  { %v675_v30 = vrot.slane %v2240_v29, %v2189_v62  ;;  %v717_v33 = vrot.slane %v2240_v29, %v2198_v3  ;;  %v2259_v43 = vsel %vm618_vm8, 1, %v1854_v63 }
  0xc8   :  { %v699_v23 = vrot.slane %v2259_v43, %v2189_v62 }
  0xca   :  { %vm706_vm8 = vcmp.eq.s32.totalorder %v699_v23, 1 }
 0x17e   :  { %v2131_v25 = vpop.f32.mrb[0].mxu1 }
 0x17f   :  { %v2133_v41 = vpop.f32.mrb[1].mxu1  ;;  %v607_v28 = vmax.f32 %v2131_v25, 0.0 }
 0x180   :  { %v2135_v45 = vpop.f32.mrb[0].mxu0  ;;  %v2151_v52 = vmax.f32 %v2133_v41, 0.0 }
 0x181   :  { %v2138_v47 = vmax.f32 %v2135_v45, 0.0  ;;  %v2140_v48 = vpop.f32.mrb[1].mxu0 }
 0x182   :  { %v2143_v50 = vmax.f32 %v2140_v48, 0.0 }
 0x183   :  { %643 = vrot.lane.b32.xlu1 %v2138_v47, %s1853_s6 }
 0x184   :  { %645 = vrot.lane.b32.xlu0 %v2143_v50, %s1853_s6 }
 0x187   :  { %647 = vrot.lane.b32.xlu1 %v607_v28, %s1853_s6 }
 0x188   :  { %621 = vrot.lane.b32.xlu0 %v2143_v50, %s1843_s22 }
 0x18b   :  { %619 = vrot.lane.b32.xlu1 %v2138_v47, %s1843_s22 }
 0x18c   :  { %625 = vrot.lane.b32.xlu0 %v2151_v52, %s1843_s22 }
 0x18f   :  { %623 = vrot.lane.b32.xlu1 %v607_v28, %s1843_s22 }
 0x193   :  { %649 = vrot.lane.b32.xlu1 %v2151_v52, %s1853_s6 }
 0x196   :  { %v2159_v51 = vpop.f32.mrb[2].mxu0 }
 0x197   :  { %v2162_v53 = vmax.f32 %v2159_v51, 0.0  ;;  %v2164_v54 = vpop.f32.mrb[3].mxu0 }
 0x198   :  { %v2166_v44 = vpop.f32.mrb[2].mxu1  ;;  %v2175_v57 = vmax.f32 %v2164_v54, 0.0 }
 0x199   :  { %v2169_v55 = vmax.f32 %v2166_v44, 0.0  ;;  %627 = vrot.lane.b32.xlu1 %v2162_v53, %s1843_s22  ;;  %v1459_v56 = vpop.f32.mrb[3].mxu1 }
 0x19b   :  { %655 = vrot.lane.b32.xlu0 %v2169_v55, %s1853_s6 }
 0x19d   :  { %651 = vrot.lane.b32.xlu1 %v2162_v53, %s1853_s6 }
 0x19f   :  { %653 = vrot.lane.b32.xlu0 %v2175_v57, %s1853_s6 }
 0x1a3   :  { %631 = vrot.lane.b32.xlu0 %v2169_v55, %s1843_s22 }
 0x1a7   :  { %629 = vrot.lane.b32.xlu0 %v2175_v57, %s1843_s22 }
 0x1f5   :  { %v644_v61 = vpop.permute.xlu1 %643 }
 0x1f6   :  { %v646_v39 = vpop.permute.xlu0 %645 }
 0x1f7   :  { %v663_v60 = vsel %vm657_vm12, %v644_v61, %v646_v39 }
 0x1f8   :  { %v708_v26 = vsel %vm701_vm15, %v663_v60, %v2143_v50  ;;  %vm700_vm15 = vcmp.eq.s32.totalorder %v675_v30, 1 }
 0x1f9   :  { %v648_v1 = vpop.permute.xlu1 %647 }
 0x1fa   :  { %v622_v11 = vpop.permute.xlu0 %621  ;;  %v662_v18 = vsel %vm657_vm12, %v646_v39, %v648_v1 }
 0x1fb   :  { %v709_v24 = vsel %vm702_vm14, %v662_v18, %v607_v28  ;;  %vm745_vm14 = vcmp.eq.s32.totalorder %v729_v17, 1 }
 0x1fd   :  { %v2212_v15 = vpop.permute.xlu1 %619 }
 0x1fe   :  { %v626_v7 = vpop.permute.xlu0 %625  ;;  %v641_v46 = vsel %vm635_vm11, %v2212_v15, %v622_v11 }
 0x201   :  { %v624_v19 = vpop.permute.xlu1 %623 }
 0x202   :  { %v639_v5 = vsel %vm635_vm11, %v624_v19, %v626_v7  ;;  %v640_v22 = vsel %vm635_vm11, %v622_v11, %v624_v19 }
 0x203   :  { %v2229_v27 = vsel %vm744_vm9, %v639_v5, %v709_v24  ;;  %v2231_v10 = vsel %vm743_vm10, %v640_v22, %v708_v26  ;;  %vm742_vm9 = vcmp.eq.s32.totalorder %v717_v33, 1  ;;  %vm616_vm10 = vcmp.ne.f32.partialorder %v1902_v6, 0.0 }
 0x204   :  { %782 = vrot.lane.b32.xlu1 %v2229_v27, %s1855_s7  ;;  %780 = vrot.lane.b32.xlu0 %v2231_v10, %s1855_s7  ;;  %v741_v6 = vrot.slane %v2259_v43, %v2198_v3  ;;  %v2279_v50 = vsel %vm616_vm10, 1, %v1854_v63 }
 0x205   :  { %v650_v2 = vpop.permute.xlu1 %649 }
 0x206   :  { %v661_v32 = vsel %vm657_vm12, %v648_v1, %v650_v2 }
 0x207   :  { %v710_v37 = vsel %vm703_vm13, %v661_v32, %v2151_v52  ;;  %vm617_vm13 = vcmp.ne.f32.partialorder %v1892_v4, 0.0  ;;  %v691_v52 = vrot.slane %v2279_v50, %v2189_v62 }
 0x208   :  { %760 = vrot.lane.b32.xlu1 %v2229_v27, %s1847_s26  ;;  %758 = vrot.lane.b32.xlu0 %v2231_v10, %s1847_s26  ;;  %v2293_v39 = vsel %vm617_vm13, 1, %v1854_v63 }
 0x209   :  { %v695_v31 = vrot.slane %v2293_v39, %v2189_v62  ;;  %v737_v63 = vrot.slane %v2293_v39, %v2198_v3 }
 0x20b   :  { %v628_v36 = vpop.permute.xlu1 %627  ;;  %vm705_vm10 = vcmp.eq.s32.totalorder %v695_v31, 1  ;;  %vm747_vm13 = vcmp.eq.s32.totalorder %v737_v63, 1 }
 0x20c   :  { %v638_v38 = vsel %vm635_vm11, %v626_v7, %v628_v36 }
 0x20d   :  { %v656_v20 = vpop.permute.xlu0 %655  ;;  %v2261_v34 = vsel %vm745_vm14, %v638_v38, %v710_v37  ;;  %vm748_vm14 = vcmp.eq.s32.totalorder %v741_v6, 1 }
 0x20e   :  { %v664_v9 = vsel %vm657_vm12, %v656_v20, %v644_v61  ;;  %762 = vrot.lane.b32.xlu0 %v2261_v34, %s1847_s26  ;;  %v733_v61 = vrot.slane %v2279_v50, %v2198_v3 }
 0x20f   :  { %v707_v49 = vsel %vm700_vm15, %v664_v9, %v2138_v47  ;;  %v652_v56 = vpop.permute.xlu1 %651  ;;  %vm704_vm15 = vcmp.eq.s32.totalorder %v691_v52, 1 }
 0x210   :  { %v2274_v40 = vsel %vm742_vm9, %v641_v46, %v707_v49  ;;  %v660_v0 = vsel %vm657_vm12, %v650_v2, %v652_v56  ;;  %vm746_vm9 = vcmp.eq.s32.totalorder %v733_v61, 1 }
 0x211   :  { %v654_v28 = vpop.permute.xlu0 %653  ;;  %778 = vrot.lane.b32.xlu1 %v2274_v40, %s1855_s7 }
 0x212   :  { %756 = vrot.lane.b32.xlu0 %v2274_v40, %s1847_s26  ;;  %v658_v47 = vsel %vm657_vm12, %v654_v28, %v656_v20  ;;  %v659_v60 = vsel %vm657_vm12, %v652_v56, %v654_v28  ;;  %vm792_vm12 = vcmp.lt.s32.totalorder %v2192_v42, 36 }
 0x213   :  { %v713_v11 = vsel %vm706_vm8, %v658_v47, %v2169_v55  ;;  %v712_v3 = vsel %vm705_vm10, %v659_v60, %v2175_v57  ;;  %v2337_v57 = vsub.s32 6, %v2184_v59 }
 0x215   :  { %v632_v1 = vpop.permute.xlu0 %631  ;;  %v853_v26 = vrot.slane %v2195_v16, %v2337_v57  ;;  %v849_v30 = vrot.slane %v2201_v8, %v2337_v57  ;;  %v857_v52 = vrot.slane %v2221_v21, %v2337_v57  ;;  %v861_v56 = vrot.slane %v2279_v50, %v2337_v57 }
 0x216   :  { %v642_v4 = vsel %vm635_vm11, %v632_v1, %v2212_v15  ;;  %v711_v15 = vsel %vm704_vm15, %v660_v0, %v2162_v53  ;;  %v2334_v53 = vsub.s32 7, %v2184_v59  ;;  %v845_v61 = vrot.slane %v2240_v29, %v2337_v57 }
 0x217   :  { %v2301_v13 = vsel %vm748_vm14, %v642_v4, %v713_v11  ;;  %vm872_vm8 = vcmp.eq.s32.totalorder %v853_v26, 1  ;;  %vm770_vm14 = vcmp.lt.s32.totalorder %v2192_v42, 92  ;;  %v1423_v42 = vmul.f32 -1.442695, %v2159_v51 }
 0x218   :  { %790 = vrot.lane.b32.xlu1 %v2301_v13, %s1855_s7  ;;  %v811_v22 = vrot.slane %v2195_v16, %v2334_v53  ;;  %v807_v14 = vrot.slane %v2201_v8, %v2334_v53  ;;  %v815_v28 = vrot.slane %v2221_v21, %v2334_v53  ;;  %v819_v47 = vrot.slane %v2279_v50, %v2334_v53 }
 0x219   :  { %v630_v35 = vpop.permute.xlu0 %629 }
 0x21a   :  { %v637_v55 = vsel %vm635_vm11, %v628_v36, %v630_v35  ;;  %v636_v62 = vsel %vm635_vm11, %v630_v35, %v632_v1  ;;  %vm830_vm11 = vcmp.eq.s32.totalorder %v811_v22, 1  ;;  %vm829_vm15 = vcmp.eq.s32.totalorder %v807_v14, 1 }
 0x21b   :  { %v2314_v18 = vsel %vm746_vm9, %v637_v55, %v711_v15  ;;  %v2323_v7 = vsel %vm747_vm13, %v636_v62, %v712_v3  ;;  %vm871_vm9 = vcmp.eq.s32.totalorder %v849_v30, 1  ;;  %vm2391_vm13 = vcmp.eq.s32.totalorder %v815_v28, 1 }
 0x21c   :  { %786 = vrot.lane.b32.xlu0 %v2314_v18, %s1855_s7  ;;  %784 = vrot.lane.b32.xlu1 %v2261_v34, %s1855_s7  ;;  %v865_v22 = vrot.slane %v2293_v39, %v2337_v57  ;;  %v869_v30 = vrot.slane %v2259_v43, %v2337_v57 }
 0x220   :  { %764 = vrot.lane.b32.xlu0 %v2314_v18, %s1847_s26  ;;  %788 = vrot.lane.b32.xlu1 %v2323_v7, %s1855_s7 }
 0x224   :  { %768 = vrot.lane.b32.xlu0 %v2301_v13, %s1847_s26  ;;  %766 = vrot.lane.b32.xlu1 %v2323_v7, %s1847_s26 }
 0x276   :  { %v781_v19 = vpop.permute.xlu0 %780  ;;  %v783_v5 = vpop.permute.xlu1 %782 }
 0x277   :  { %v797_v2 = vsel %vm792_vm12, %v781_v19, %v783_v5 }
 0x278   :  { %v837_v33 = vsel %vm830_vm11, %v797_v2, %v2229_v27  ;;  %vm832_vm11 = vcmp.eq.s32.totalorder %v819_v47, 1 }
 0x27a   :  { %v759_v24 = vpop.permute.xlu0 %758  ;;  %v761_v17 = vpop.permute.xlu1 %760 }
 0x27b   :  { %v775_v8 = vsel %vm770_vm14, %v759_v24, %v761_v17 }
 0x280   :  { %v763_v32 = vpop.permute.xlu0 %762 }
 0x281   :  { %v774_v16 = vsel %vm770_vm14, %v761_v17, %v763_v32  ;;  %v827_v17 = vrot.slane %v2259_v43, %v2334_v53  ;;  %v1420_v43 = vmul.f32 -1.442695, %v2140_v48  ;;  %v1424_v48 = vmul.f32 -1.442695, %v2164_v54 }
 0x282   :  { %v2354_v36 = vsel %vm872_vm8, %v774_v16, %v837_v33  ;;  %vm873_vm8 = vcmp.eq.s32.totalorder %v857_v52, 1  ;;  %v1419_v33 = vmul.f32 -1.442695, %v2135_v45  ;;  %v1422_v45 = vmul.f32 -1.442695, %v2133_v41 }
 0x283   :  { %1077 = vrot.lane.b32.xlu0 %v2354_v36, %s1850_s4  ;;  %v779_v38 = vpop.permute.xlu1 %778 }
 0x284   :  { %v798_v37 = vsel %vm792_vm12, %v779_v38, %v781_v19  ;;  %v2369_v46 = vpop.permute.xlu0 %756  ;;  %1813 = vpow2.f32 %v1419_v33 }
 0x285   :  { %v836_v20 = vsel %vm829_vm15, %v798_v37, %v2231_v10  ;;  %v803_v10 = vrot.slane %v2240_v29, %v2334_v53  ;;  %vm874_vm15 = vcmp.eq.s32.totalorder %v861_v56, 1  ;;  %v776_v19 = vsel %vm770_vm14, %v2369_v46, %v759_v24 }
 0x286   :  { %v2363_v27 = vsel %vm871_vm9, %v775_v8, %v836_v20  ;;  %vm870_vm9 = vcmp.eq.s32.totalorder %v845_v61, 1  ;;  %1815 = vpow2.f32 %v1420_v43 }
 0x287   :  { %v1718_v9 = vpack.i.bf16 %v2354_v36, %v2363_v27  ;;  %vm2387_vm10 = vcmp.eq.s32.totalorder %v803_v10, 1 }
 0x289   :  { %1719 = vrot.lane.b32.xlu0 %v1718_v9, %s1844_s23  ;;  %1709 = vrot.lane.b32.xlu1 %v1718_v9, %s1842_s21 }
 0x28a   :  { %v791_v49 = vpop.permute.xlu1 %790 }
 0x28b   :  { %v799_v31 = vsel %vm792_vm12, %v791_v49, %v779_v38  ;;  %v1421_v38 = vmul.f32 -1.442695, %v2131_v25  ;;  %v1425_v25 = vmul.f32 -1.442695, %v2166_v44 }
 0x28c   :  { %v835_v35 = vsel %vm2387_vm10, %v799_v31, %v2274_v40 }
 0x28d   :  { %1729 = vrot.lane.b32.xlu0 %v1718_v9, %s1846_s25  ;;  %1714 = vrot.lane.b32.xlu1 %v1718_v9, %s1843_s22  ;;  %1817 = vpow2.f32 %v1421_v38 }
 0x28e   :  { %v787_v23 = vpop.permute.xlu0 %786  ;;  %v785_v6 = vpop.permute.xlu1 %784  ;;  %1819 = vpow2.f32 %v1422_v45 }
 0x28f   :  { %v795_v21 = vsel %vm792_vm12, %v785_v6, %v787_v23  ;;  %v796_v29 = vsel %vm792_vm12, %v783_v5, %v785_v6  ;;  %v823_v5 = vrot.slane %v2293_v39, %v2334_v53  ;;  %1821 = vpow2.f32 %v1423_v42 }
 0x290   :  { %v838_v55 = vsel %vm2391_vm13, %v796_v29, %v2261_v34  ;;  %v839_v15 = vsel %vm832_vm11, %v795_v21, %v2314_v18  ;;  %v2424_v34 = vsel %vm870_vm9, %v776_v19, %v835_v35  ;;  %vm875_vm13 = vcmp.eq.s32.totalorder %v865_v22, 1 }
 0x291   :  { %1739 = vrot.lane.b32.xlu0 %v1718_v9, %s1848_s27  ;;  %1724 = vrot.lane.b32.xlu1 %v1718_v9, %s1845_s24  ;;  %vm833_vm10 = vcmp.eq.s32.totalorder %v823_v5, 1  ;;  %vm834_vm11 = vcmp.eq.s32.totalorder %v827_v17, 1  ;;  %1823 = vpow2.f32 %v1424_v48 }
 0x292   :  { %v765_v1 = vpop.permute.xlu0 %764  ;;  %v789_v4 = vpop.permute.xlu1 %788  ;;  %1825 = vpow2.f32 %v1425_v25 }
 0x293   :  { %v773_v50 = vsel %vm770_vm14, %v763_v32, %v765_v1  ;;  %v794_v26 = vsel %vm792_vm12, %v787_v23, %v789_v4 }
 0x294   :  { %v2413_v62 = vsel %vm873_vm8, %v773_v50, %v838_v55  ;;  %v840_v14 = vsel %vm833_vm10, %v794_v26, %v2323_v7  ;;  %v793_v7 = vsel %vm792_vm12, %v789_v4, %v791_v49  ;;  %vm876_vm8 = vcmp.eq.s32.totalorder %v869_v30, 1 }
 0x295   :  { %1734 = vrot.lane.b32.xlu1 %v1718_v9, %s1847_s26  ;;  %v1753_v18 = vpack.i.bf16 %v2413_v62, %v2424_v34  ;;  %v841_v57 = vsel %vm834_vm11, %v793_v7, %v2301_v13  ;;  %v1814_v13 = vpop.eup %1813 }
 0x296   :  { %v767_v63 = vpop.permute.xlu1 %766  ;;  %v769_v24 = vpop.permute.xlu0 %768  ;;  %v584_v51 = vadd.f32 1.0, %v1814_v13 }
 0x297   :  { %v772_v60 = vsel %vm770_vm14, %v765_v1, %v767_v63  ;;  %v771_v2 = vsel %vm770_vm14, %v767_v63, %v769_v24  ;;  %v777_v53 = vsel %vm770_vm14, %v769_v24, %v2369_v46  ;;  %v1816_v41 = vpop.eup %1815 }
 0x298   :  { %v2415_v3 = vsel %vm874_vm15, %v772_v60, %v839_v15  ;;  %v2442_v39 = vsel %vm875_vm13, %v771_v2, %v840_v14  ;;  %v883_v16 = vsel %vm876_vm8, %v777_v53, %v841_v57  ;;  %v1818_v37 = vpop.eup %1817  ;;  %v585_v54 = vadd.f32 1.0, %v1816_v41 }
 0x299   :  { %1075 = vrot.lane.b32.xlu1 %v2363_v27, %s1850_s4  ;;  %v1743_v40 = vpack.i.bf16 %v2415_v3, %v2413_v62  ;;  %v1778_v32 = vpack.i.bf16 %v2442_v39, %v2415_v3  ;;  %v1820_v8 = vpop.eup %1819  ;;  %1827 = vrcp.f32 %v584_v51  ;;  %v586_v44 = vadd.f32 1.0, %v1818_v37 }
 0x29a   :  { %v1822_v20 = vpop.eup %1821  ;;  %1829 = vrcp.f32 %v585_v54  ;;  %v587_v9 = vadd.f32 1.0, %v1820_v8  ;;  %v1808_v49 = vpack.i.bf16 %v883_v16, %v2442_v39 }
 0x29b   :  { %1744 = vrot.lane.b32.xlu0 %v1743_v40, %s1848_s27  ;;  %v1824_v46 = vpop.eup %1823  ;;  %1831 = vrcp.f32 %v586_v44  ;;  %v588_v23 = vadd.f32 1.0, %v1822_v20 }
 0x29c   :  { %v1826_v6 = vpop.eup %1825  ;;  %1833 = vrcp.f32 %v587_v9  ;;  %v589_v10 = vadd.f32 1.0, %v1824_v46 }
 0x29d   :  { %1754 = vrot.lane.b32.xlu1 %v1753_v18, %s1843_s22  ;;  %1835 = vrcp.f32 %v588_v23  ;;  %v590_v28 = vadd.f32 1.0, %v1826_v6 }
 0x29e   :  { %1837 = vrcp.f32 %v589_v10 }
 0x29f   :  { %1749 = vrot.lane.b32.xlu0 %v1753_v18, %s1842_s21  ;;  %1839 = vrcp.f32 %v590_v28 }
 0x2a1   :  { %1764 = vrot.lane.b32.xlu1 %v1753_v18, %s1845_s24 }
 0x2a3   :  { %1759 = vrot.lane.b32.xlu0 %v1753_v18, %s1844_s23  ;;  %v1828_v47 = vpop.eup %1827 }
 0x2a4   :  { %v1830_v52 = vpop.eup %1829  ;;  %v1319_v56 = vrot.slane %v1828_v47, 7 }
 0x2a5   :  { %1774 = vrot.lane.b32.xlu1 %v1753_v18, %s1847_s26  ;;  %v1832_v61 = vpop.eup %1831  ;;  %v1320_v1 = vrot.slane %v1830_v52, 7 }
 0x2a6   :  { %v1834_v4 = vpop.eup %1833  ;;  %v1321_v11 = vrot.slane %v1832_v61, 7 }
 0x2a7   :  { %1769 = vrot.lane.b32.xlu0 %v1753_v18, %s1846_s25  ;;  %v1836_v0 = vpop.eup %1835  ;;  %v1322_v31 = vrot.slane %v1834_v4, 7 }
 0x2a8   :  { %v1838_v21 = vpop.eup %1837  ;;  %v1323_v29 = vrot.slane %v1836_v0, 7 }
 0x2a9   :  { %1779 = vrot.lane.b32.xlu1 %v1778_v32, %s1842_s21  ;;  %v1840_v50 = vpop.eup %1839  ;;  %v1324_v63 = vrot.slane %v1838_v21, 7 }
 0x2aa   :  { %v1325_v35 = vrot.slane %v1840_v50, 7 }
 0x2ab   :  { %1047 = vrot.lane.b32.xlu0 %v2424_v34, %s1848_s27 }
 0x2ad   :  { %1073 = vrot.lane.b32.xlu1 %v2424_v34, %s1850_s4 }
 0x2af   :  { %903 = vrot.lane.b32.xlu0 %v883_v16, %s1842_s21 }
 0x2b1   :  { %929 = vrot.lane.b32.xlu1 %v883_v16, %s1843_s22 }
 0x2b3   :  { %1784 = vrot.lane.b32.xlu0 %v1778_v32, %s1843_s22 }
 0x2b5   :  { %955 = vrot.lane.b32.xlu1 %v883_v16, %s1844_s23 }
 0x2b7   :  { %1789 = vrot.lane.b32.xlu0 %v1778_v32, %s1844_s23 }
 0x2b9   :  { %981 = vrot.lane.b32.xlu1 %v883_v16, %s1845_s24 }
 0x2bb   :  { %1794 = vrot.lane.b32.xlu0 %v1778_v32, %s1845_s24 }
 0x2bd   :  { %1007 = vrot.lane.b32.xlu1 %v883_v16, %s1846_s25 }
 0x2bf   :  { %1799 = vrot.lane.b32.xlu0 %v1778_v32, %s1846_s25 }
 0x2c1   :  { %1033 = vrot.lane.b32.xlu1 %v883_v16, %s1847_s26 }
 0x2c3   :  { %1804 = vrot.lane.b32.xlu0 %v1778_v32, %s1847_s26 }
 0x2c5   :  { %1809 = vrot.lane.b32.xlu1 %v1808_v49, %s1848_s27 }
 0x2c7   :  { %1079 = vrot.lane.b32.xlu0 %v2413_v62, %s1850_s4 }
 0x2c9   :  { %1081 = vrot.lane.b32.xlu1 %v2415_v3, %s1850_s4 }
 0x2cb   :  { %1083 = vrot.lane.b32.xlu0 %v2442_v39, %s1850_s4 }
 0x2cd   :  { %1085 = vrot.lane.b32.xlu1 %v883_v16, %s1850_s4 }
 0x2cf   :  { %1326 = vrot.lane.b32.xlu0 %v1319_v56, %s1845_s24 }
 0x2d1   :  { %1328 = vrot.lane.b32.xlu1 %v1320_v1, %s1845_s24 }
 0x2d3   :  { %1330 = vrot.lane.b32.xlu0 %v1321_v11, %s1845_s24 }
 0x2d5   :  { %1332 = vrot.lane.b32.xlu1 %v1322_v31, %s1845_s24 }
 0x2d7   :  { %1334 = vrot.lane.b32.xlu0 %v1323_v29, %s1845_s24 }
 0x2d9   :  { %1336 = vrot.lane.b32.xlu1 %v1324_v63, %s1845_s24 }
 0x2db   :  { %1338 = vrot.lane.b32.xlu0 %v1325_v35, %s1845_s24 }
 0x2f5   :  { %v2497_v55 = vpop.permute.xlu0 %1077 }
 0x2fb   :  { %v1710_v15 = vpop.permute.xlu1 %1709  ;;  %v2499_v40 = vpop.permute.xlu0 %1719 }
 0x2fc   :  { %v1712_v60 = vunpack.i.h.bf16 %v1710_v15  ;;  %v1711_v19 = vunpack.i.l.bf16 %v1710_v15  ;;  %v1721_v53 = vunpack.i.l.bf16 %v2499_v40 }
 0x2fe   :  { %v906_v18 = vsel %vm44_vm0, %v1711_v19, %v1712_v60 }
 0x2ff   :  { %v2502_v5 = vpop.permute.xlu1 %1714  ;;  %v1520_v22 = vpack.c.bf16 %v906_v18, %v2363_v27  ;;  %v2505_v24 = vpop.permute.xlu0 %1729  ;;  %v1722_v27 = vunpack.i.h.bf16 %v2499_v40 }
 0x300   :  { %v1717_v32 = vunpack.i.h.bf16 %v2502_v5  ;;  %v1716_v7 = vunpack.i.l.bf16 %v2502_v5  ;;  %v1732_v48 = vunpack.i.h.bf16 %v2505_v24  ;;  %v1731_v25 = vunpack.i.l.bf16 %v2505_v24 }
 0x301   :  { %1521 = vmatprep.subr.bf16.mxu0 %v1520_v22  ;;  %v958_v54 = vsel %vm106_vm2, %v1721_v53, %v1722_v27 }
 0x302   :  { %v932_v42 = vsel %vm75_vm1, %v1716_v7, %v1717_v32  ;;  %v1010_v10 = vsel %vm168_vm4, %v1731_v25, %v1732_v48 }
 0x303   :  { %v2507_v26 = vpop.permute.xlu1 %1724  ;;  %v2511_v14 = vpop.permute.xlu0 %1739  ;;  %v1524_v44 = vpack.c.bf16 %v958_v54, %v932_v42 }
 0x304   :  { %v1727_v16 = vunpack.i.h.bf16 %v2507_v26  ;;  %v1726_v38 = vunpack.i.l.bf16 %v2507_v26  ;;  %v1742_v28 = vunpack.i.h.bf16 %v2511_v14  ;;  %v1741_v47 = vunpack.i.l.bf16 %v2511_v14 }
 0x307   :  { %v2509_v2 = vpop.permute.xlu1 %1734 }
 0x308   :  { %v1737_v20 = vunpack.i.h.bf16 %v2509_v2  ;;  %v1736_v9 = vunpack.i.l.bf16 %v2509_v2 }
 0x30a   :  { %v1036_v0 = vsel %vm199_vm5, %v1736_v9, %v1737_v20 }
 0x30b   :  { %v2513_v17 = vpop.permute.xlu1 %1075 }
 0x30d   :  { %v2515_v30 = vpop.permute.xlu0 %1744 }
 0x30e   :  { %v1747_v5 = vunpack.i.h.bf16 %v2515_v30 }
 0x30f   :  { %v2519_v33 = vpop.permute.xlu1 %1754 }
 0x310   :  { %v1756_v13 = vunpack.i.l.bf16 %v2519_v33 }
 0x311   :  { %v1750_v43 = vpop.permute.xlu0 %1749 }
 0x312   :  { %v1751_v57 = vunpack.i.l.bf16 %v1750_v43  ;;  %v931_v49 = vsel %vm75_vm1, %v1756_v13, %v1716_v7  ;;  %v1752_v52 = vunpack.i.h.bf16 %v1750_v43 }
 0x313   :  { %v2525_v45 = vpop.permute.xlu1 %1764 }
 0x314   :  { %v905_v41 = vsel %vm44_vm0, %v1751_v57, %v1711_v19  ;;  %v1766_v23 = vunpack.i.l.bf16 %v2525_v45  ;;  %v907_v63 = vsel %vm44_vm0, %v1712_v60, %v1752_v52  ;;  %v1062_v19 = vsel %vm230_vm6, %v1741_v47, %v1742_v28 }
 0x315   :  { %v1522_v51 = vpack.c.bf16 %v905_v41, %v2424_v34  ;;  %v2535_v37 = vpop.permute.xlu0 %1759  ;;  %v984_v34 = vsel %vm137_vm3, %v1726_v38, %v1727_v16  ;;  %v1532_v22 = vpack.c.bf16 %v1062_v19, %v1036_v0  ;;  %v1538_v57 = vpack.c.bf16 %v907_v63, %v2354_v36 }
 0x316   :  { %v1761_v8 = vunpack.i.l.bf16 %v2535_v37  ;;  %v1528_v4 = vpack.c.bf16 %v1010_v10, %v984_v34  ;;  %v983_v31 = vsel %vm137_vm3, %v1766_v23, %v1726_v38 }
 0x317   :  { %v2543_v46 = vpop.permute.xlu1 %1774  ;;  %1523 = vmatpush1.bf16.msra.mxu0 %v1522_v51  ;;  %v1088_v51 = vsel %vm261_vm7, %v2513_v17, %v2497_v55 }
 0x318   :  { %v957_v6 = vsel %vm106_vm2, %v1761_v8, %v1721_v53  ;;  %1525 = vmatprep.subr.bf16.mxu0 %v1524_v44  ;;  %v1776_v21 = vunpack.i.l.bf16 %v2543_v46  ;;  %v1762_v44 = vunpack.i.h.bf16 %v2535_v37 }
 0x319   :  { %v1526_v56 = vpack.c.bf16 %v957_v6, %v931_v49  ;;  %v2556_v61 = vpop.permute.xlu0 %1769  ;;  %v2587_v6 = vld [vmem:[%s2655_s1] sm:$0xff] }
 0x31a   :  { %v1771_v1 = vunpack.i.l.bf16 %v2556_v61  ;;  %v1035_v60 = vsel %vm199_vm5, %v1776_v21, %v1736_v9  ;;  %v959_v10 = vsel %vm106_vm2, %v1722_v27, %v1762_v44 }
 0x31b   :  { %v1780_v11 = vpop.permute.xlu1 %1779  ;;  %1527 = vmatpush1.bf16.msra.mxu0 %v1526_v56 }
 0x31c   :  { %v1009_v29 = vsel %vm168_vm4, %v1771_v1, %v1731_v25  ;;  %v1781_v50 = vunpack.i.l.bf16 %v1780_v11  ;;  %1529 = vmatprep.subr.bf16.mxu0 %v1528_v4  ;;  %v1782_v38 = vunpack.i.h.bf16 %v1780_v11 }
 0x31d   :  { %v1530_v35 = vpack.c.bf16 %v1009_v29, %v983_v31  ;;  %v1048_v15 = vpop.permute.xlu0 %1047  ;;  %v1772_v29 = vunpack.i.h.bf16 %v2556_v61 }
 0x31e   :  { %v1061_v18 = vsel %vm230_vm6, %v1048_v15, %v1741_v47  ;;  %v908_v7 = vsel %vm44_vm0, %v1752_v52, %v1781_v50  ;;  %v1767_v15 = vunpack.i.h.bf16 %v2525_v45 }
 0x31f   :  { %v1074_v53 = vpop.permute.xlu1 %1073  ;;  %1531 = vmatpush1.bf16.msra.mxu0 %v1530_v35  ;;  %v1536_v43 = vpack.c.bf16 %v908_v7, %v2413_v62  ;;  %v1534_v42 = vpack.c.bf16 %v1061_v18, %v1035_v60  ;;  %v909_v62 = vsel %vm44_vm0, %v1781_v50, %v1782_v38  ;;  %v1746_v7 = vunpack.i.l.bf16 %v2515_v30 }
 0x320   :  { %1533 = vmatprep.subr.bf16.mxu0 %v1532_v22  ;;  %v1087_v54 = vsel %vm261_vm7, %v1074_v53, %v2513_v17  ;;  %v1554_v9 = vpack.c.bf16 %v909_v62, %v2415_v3  ;;  %v1757_v17 = vunpack.i.h.bf16 %v2519_v33  ;;  %v1011_v61 = vsel %vm168_vm4, %v1732_v48, %v1772_v29 }
 0x321   :  { %v904_v25 = vpop.permute.xlu0 %903  ;;  %1537 = vmatprep.subr.bf16.mxu1 %v1536_v43  ;;  %v985_v30 = vsel %vm137_vm3, %v1727_v16, %v1767_v15  ;;  %v1064_v2 = vsel %vm230_vm6, %v1746_v7, %v1747_v5 }
 0x322   :  { %1539 = vmatpush1.bf16.msra.mxu1 %v1538_v57  ;;  %v910_v13 = vsel %vm44_vm0, %v1782_v38, %v904_v25  ;;  %vm2662_vm0 = vcmask 588800  }
 0x323   :  { %v930_v41 = vpop.permute.xlu1 %929  ;;  %1535 = vmatpush1.bf16.msra.mxu0 %v1534_v42  ;;  %v1552_v8 = vpack.c.bf16 %v910_v13, %v2442_v39 }
 0x324   :  { %1115 = vmatprep.subr.mxu0 %v1088_v51 }
 0x325   :  { %v1785_v36 = vpop.permute.xlu0 %1784 }
 0x326   :  { %v1787_v34 = vunpack.i.h.bf16 %v1785_v36  ;;  %v1786_v49 = vunpack.i.l.bf16 %v1785_v36  ;;  %v1063_v36 = vsel %vm230_vm6, %v1742_v28, %v1746_v7 }
 0x327   :  { %v956_v23 = vpop.permute.xlu1 %955  ;;  %1116 = vmatpush1.msra.mxu0 %v1087_v54 }
 0x328   :  { %1426 = vmatmul.mubr.msk.f32.vlgmr.msra.gmra.mrb[4].mxu0 %vm2662_vm0, %v2587_v6  ;;  %1553 = vmatprep.subr.bf16.mxu0 %v1552_v8  ;;  %v935_v47 = vsel %vm75_vm1, %v1786_v49, %v1787_v34  ;;  %v934_v56 = vsel %vm75_vm1, %v1757_v17, %v1786_v49  ;;  %v936_v33 = vsel %vm75_vm1, %v1787_v34, %v930_v41 }
 0x329   :  { %v1790_v39 = vpop.permute.xlu0 %1789  ;;  %1555 = vmatpush1.bf16.msra.mxu0 %v1554_v9  ;;  %1305 = vmatprep.mubr.f32.mxu0 %v1849_v12  ;;  %v933_v12 = vsel %vm75_vm1, %v1717_v32, %v1757_v17  ;;  %v1777_v32 = vunpack.i.h.bf16 %v2543_v46  ;;  %v1546_v41 = vpack.c.bf16 %v1011_v61, %v985_v30  ;;  %vm2663_vm1 = vmmov %vm2662_vm0 }
 0x32a   :  { %v1792_v3 = vunpack.i.h.bf16 %v1790_v39  ;;  %v1791_v37 = vunpack.i.l.bf16 %v1790_v39  ;;  %v1542_v21 = vpack.c.bf16 %v959_v10, %v933_v12 }
 0x32b   :  { %v982_v52 = vpop.permute.xlu1 %981  ;;  %v1037_v13 = vsel %vm199_vm5, %v1737_v20, %v1777_v32 }
 0x32c   :  { %v961_v1 = vsel %vm106_vm2, %v1791_v37, %v1792_v3  ;;  %v960_v4 = vsel %vm106_vm2, %v1762_v44, %v1791_v37  ;;  %v962_v11 = vsel %vm106_vm2, %v1792_v3, %v956_v23  ;;  %v1550_v44 = vpack.c.bf16 %v1063_v36, %v1037_v13  ;;  %vm2664_vm2 = vmmov %vm2662_vm0 }
 0x32d   :  { %v1558_v40 = vpack.c.bf16 %v961_v1, %v935_v47  ;;  %v1795_v0 = vpop.permute.xlu0 %1794  ;;  %v1540_v27 = vpack.c.bf16 %v960_v4, %v934_v56  ;;  %v1556_v31 = vpack.c.bf16 %v962_v11, %v936_v33 }
 0x32e   :  { %v1797_v50 = vunpack.i.h.bf16 %v1795_v0  ;;  %v1796_v63 = vunpack.i.l.bf16 %v1795_v0 }
 0x32f   :  { %v1008_v35 = vpop.permute.xlu1 %1007  ;;  %1541 = vmatprep.subr.bf16.mxu1 %v1540_v27  ;;  %1557 = vmatprep.subr.bf16.mxu0 %v1556_v31 }
 0x330   :  { %1543 = vmatpush1.bf16.msra.mxu1 %v1542_v21  ;;  %1559 = vmatpush1.bf16.msra.mxu0 %v1558_v40  ;;  %v987_v53 = vsel %vm137_vm3, %v1796_v63, %v1797_v50  ;;  %v986_v57 = vsel %vm137_vm3, %v1767_v15, %v1796_v63  ;;  %v988_v60 = vsel %vm137_vm3, %v1797_v50, %v982_v52  ;;  %v1856_v50 = vmov 1966171168  }
 0x331   :  { %v1800_v19 = vpop.permute.xlu0 %1799  ;;  %v1368_v63 = vunpack.c.l.s4 %v1856_v50 }
 0x332   :  { %v1802_v18 = vunpack.i.h.bf16 %v1800_v19  ;;  %v1801_v22 = vunpack.i.l.bf16 %v1800_v19 }
 0x333   :  { %v1034_v43 = vpop.permute.xlu1 %1033 }
 0x334   :  { %v1013_v45 = vsel %vm168_vm4, %v1801_v22, %v1802_v18  ;;  %v1012_v38 = vsel %vm168_vm4, %v1772_v29, %v1801_v22  ;;  %v1014_v46 = vsel %vm168_vm4, %v1802_v18, %v1008_v35  ;;  %v1369_v35 = vunpack.c.0.s8 %v1368_v63 }
 0x335   :  { %v1562_v24 = vpack.c.bf16 %v1013_v45, %v987_v53  ;;  %v1805_v42 = vpop.permute.xlu0 %1804  ;;  %v1544_v48 = vpack.c.bf16 %v1012_v38, %v986_v57  ;;  %v1560_v25 = vpack.c.bf16 %v1014_v46, %v988_v60  ;;  %vm1408_vm4 = vcmp.lt.s32.totalorder %v633_v58, 768 }
 0x336   :  { %v1807_v51 = vunpack.i.h.bf16 %v1805_v42  ;;  %v1806_v62 = vunpack.i.l.bf16 %v1805_v42  ;;  %v1372_v7 = vsub.s32 %v1369_v35, %v2184_v59 }
 0x337   :  { %v1810_v54 = vpop.permute.xlu1 %1809  ;;  %1545 = vmatprep.subr.bf16.mxu1 %v1544_v48  ;;  %1561 = vmatprep.subr.bf16.mxu0 %v1560_v25 }
 0x338   :  { %v1812_v26 = vunpack.i.h.bf16 %v1810_v54  ;;  %v1811_v16 = vunpack.i.l.bf16 %v1810_v54  ;;  %1547 = vmatpush1.bf16.msra.mxu1 %v1546_v41  ;;  %1563 = vmatpush1.bf16.msra.mxu0 %v1562_v24  ;;  %v1038_v8 = vsel %vm199_vm5, %v1777_v32, %v1806_v62  ;;  %v1039_v34 = vsel %vm199_vm5, %v1806_v62, %v1807_v51 }
 0x339   :  { %v1080_v20 = vpop.permute.xlu0 %1079  ;;  %v1548_v9 = vpack.c.bf16 %v1064_v2, %v1038_v8  ;;  %v1040_v28 = vsel %vm199_vm5, %v1807_v51, %v1034_v43 }
 0x33a   :  { %v1065_v14 = vsel %vm230_vm6, %v1747_v5, %v1811_v16  ;;  %v1066_v49 = vsel %vm230_vm6, %v1811_v16, %v1812_v26  ;;  %v1089_v10 = vsel %vm261_vm7, %v2497_v55, %v1080_v20 }
 0x33b   :  { %v1566_v23 = vpack.c.bf16 %v1065_v14, %v1039_v34  ;;  %v1082_v17 = vpop.permute.xlu1 %1081  ;;  %1549 = vmatprep.subr.bf16.mxu1 %v1548_v9  ;;  %v1564_v39 = vpack.c.bf16 %v1066_v49, %v1040_v28 }
 0x33c   :  { %1551 = vmatpush1.bf16.msra.mxu1 %v1550_v44  ;;  %v1090_v3 = vsel %vm261_vm7, %v1080_v20, %v1082_v17 }
 0x33d   :  { %1186 = vmatprep.subr.mxu1 %v1090_v3  ;;  %1565 = vmatprep.subr.bf16.mxu0 %v1564_v39  ;;  %v1084_v37 = vpop.permute.xlu0 %1083 }
 0x33e   :  { %1567 = vmatpush1.bf16.msra.mxu0 %v1566_v23  ;;  %v1091_v56 = vsel %vm261_vm7, %v1082_v17, %v1084_v37 }
 0x33f   :  { %v1086_v47 = vpop.permute.xlu1 %1085 }
 0x340   :  { %1187 = vmatpush1.msra.mxu1 %v1089_v10  ;;  %v1092_v52 = vsel %vm261_vm7, %v1084_v37, %v1086_v47 }
 0x341   :  { %1427 = vmatmul.mubr.msk.f32.vlgmr.msra.gmra.mrb[4].mxu1 %vm2663_vm1, %v2587_v6  ;;  %1257 = vmatprep.subr.mxu0 %v1092_v52  ;;  %v1327_v1 = vpop.permute.xlu0 %1326 }
 0x342   :  { %1258 = vmatpush1.msra.mxu0 %v1091_v56 }
 0x343   :  { %1428 = vmatmul.mubr.msk.f32.vlgmr.msra.gmra.mrb[6].mxu0 %vm2664_vm2, %v2587_v6  ;;  %v1329_v4 = vpop.permute.xlu1 %1328 }
 0x344   :  { %v1340_v55 = vsel %vm137_vm3, %v1327_v1, %v1329_v4 }
 0x345   :  { %v1331_v33 = vpop.permute.xlu0 %1330 }
 0x346   :  { %v1341_v0 = vsel %vm137_vm3, %v1329_v4, %v1331_v33 }
 0x347   :  { %v1333_v21 = vpop.permute.xlu1 %1332 }
 0x348   :  { %v1342_v5 = vsel %vm137_vm3, %v1331_v33, %v1333_v21 }
 0x349   :  { %v1335_v29 = vpop.permute.xlu0 %1334 }
 0x34a   :  { %v1343_v22 = vsel %vm137_vm3, %v1333_v21, %v1335_v29 }
 0x34b   :  { %v1337_v15 = vpop.permute.xlu1 %1336 }
 0x34c   :  { %v1344_v43 = vsel %vm137_vm3, %v1335_v29, %v1337_v15 }
 0x34d   :  { %v1339_v19 = vpop.permute.xlu0 %1338 }
 0x34e   :  { %v1345_v38 = vsel %vm137_vm3, %v1337_v15, %v1339_v19 }
 0x3fb   :  { %v1165_v11 = vpop.f32.mrb[4].mxu0 }
 0x3fc   :  { %v1352_v12 = vmul.f32 %v1340_v55, %v1165_v11  ;;  %v1167_v40 = vpop.f32.mrb[5].mxu0 }
 0x3fd   :  { %v1353_v27 = vmul.f32 %v1341_v0, %v1167_v40 }
 0x3ff   :  { %v1364_v31 = vcombine.high %v1352_v12, %v1353_v27 }
 0x401   :  { %v1373_v30 = vrot.slane %v1364_v31, %v1372_v7 }
 0x414   :  { %v1236_v6 = vpop.f32.mrb[4].mxu1 }
 0x415   :  { %v1354_v32 = vmul.f32 %v1342_v5, %v1236_v6  ;;  %v1238_v18 = vpop.f32.mrb[5].mxu1 }
 0x416   :  { %v1355_v61 = vmul.f32 %v1343_v22, %v1238_v18  ;;  %v1307_v53 = vpop.f32.mrb[6].mxu0 }
 0x417   :  { %v1356_v57 = vmul.f32 %v1344_v43, %v1307_v53  ;;  %v1309_v45 = vpop.f32.mrb[7].mxu0 }
 0x418   :  { %v1365_v60 = vcombine.high %v1354_v32, %v1355_v61  ;;  %v1357_v46 = vmul.f32 %v1345_v38, %v1309_v45 }
 0x41a   :  { %v1380_v24 = vrot.slane %v1365_v60, %v1372_v7  ;;  %v1366_v42 = vcombine.high %v1356_v57, %v1357_v46 }
 0x41c   :  { %v1388_v48 = vcombine.high %v1373_v30, %v1380_v24  ;;  %v1387_v25 = vrot.slane %v1366_v42, %v1372_v7 }
 0x41e   :  { %v1389_v13 = vcombine.high %v1387_v25, %v1387_v25  ;;  %v1396_v41 = vrot.slane %v1388_v48, %v1372_v7 }
 0x420   :  { %v1403_v51 = vrot.slane %v1389_v13, %v1372_v7 }
 0x422   :  { %v1404_v59 = vcombine.low %v1396_v41, %v1403_v51 }
 0x424   :  { %1410 = vst.msk [vmem:[%s2656_s2] sm:$0x3f] %vm1408_vm4, %v1404_v59 }

</bundles_post_ra>
